<compile_context>
chip_gen: v6e
topology: v6e:2x2x1
jax: 0.10.0
libtpu: 0.0.40
codegen_flags: <defaults>
</compile_context>

<pallas_src>
import math

import jax
import jax.numpy as jnp
from jax.experimental import pallas as pl
from jax.experimental.pallas import tpu as pltpu


def _round_up(x, m):
    return (x + m - 1) // m * m


def batch_embedding_kernel(idx_ref, waug_ref, s_ref, o_ref, acc_ref):
    """One (batch row, seq tile) output block; accumulates over vocab tiles."""
    k = pl.program_id(2)
    n_k = pl.num_programs(2)

    tv = waug_ref.shape[0]
    e_size = o_ref.shape[1]
    ts = o_ref.shape[2]
    hpad = o_ref.shape[3]

    @pl.when(k == 0)
    def _init():
        acc_ref[...] = jnp.zeros_like(acc_ref)

    # One-hot over the current vocab tile only: one_hot[v, s] = (k*TV + v == idx[s]).
    idx_row = idx_ref[0]                                             # (1, TS) int32
    iota_v = jax.lax.broadcasted_iota(jnp.int32, (tv, ts), 0) + k * tv
    one_hot = (iota_v == idx_row).astype(jnp.float32)                # (TV, TS)

    # Fused gather on the MXU: one_hot^T @ [W | r^T]  ->  (TS, Hpad + Epad).
    # Each index falls into exactly one vocab tile, so summing tiles is exact.
    acc_ref[...] += jax.lax.dot_general(
        one_hot, waug_ref[...],
        dimension_numbers=(((0,), (0,)), ((), ())),
        preferred_element_type=jnp.float32)

    @pl.when(k == n_k - 1)
    def _finalize():
        gaug = acc_ref[...]
        gw = gaug[:, :hpad]                                          # (TS, Hpad) = weight[idx]
        # Per-e modulation: (TS,1) lane-broadcast * (1,Hpad) sublane-broadcast
        # on the VPU; static Python loop (E is small) bounds live ranges to one
        # (TS, Hpad) slab at a time -> no (E,S,H) materialization / no spills.
        for e in range(e_size):
            gr_col = gaug[:, hpad + e:hpad + e + 1]                  # (TS, 1)  = r[e, idx]
            s_row = s_ref[e:e + 1, :]                                # (1, Hpad)
            o_ref[0, e] = ((gw * gr_col) * s_row).astype(o_ref.dtype)


def batch_embedding(indices, weight, r, s, *, ts_tile=256, tv_tile=512):
    """indices: (B, S) int; weight: (V, H); r: (E, V); s: (E, H).
    Returns (B, E, S, H) float32 (the 2-D input path of BatchEmbedding.forward)."""
    B, S = indices.shape
    V, H = weight.shape
    E = r.shape[0]

    # Lane/sublane-friendly padded sizes and tile choices.
    Hpad = _round_up(H, 128)                 # lane-dense output stores
    Epad = _round_up(E, 128)                 # lane-aligned r^T columns in W_aug
    TS = min(ts_tile, _round_up(S, 8))
    Spad = _round_up(S, TS)
    TV = min(tv_tile, _round_up(V, 8))
    Vpad = _round_up(V, TV)
    Haug = Hpad + Epad
    n_s = Spad // TS
    n_k = Vpad // TV

    f32 = jnp.float32
    # Augmented table [W | r^T], zero-padded: fuses the embedding gather and the
    # per-token r gather into one one-hot matmul on the MXU.
    w_aug = jnp.zeros((Vpad, Haug), f32)
    w_aug = w_aug.at[:V, :H].set(weight.astype(f32))
    w_aug = w_aug.at[:V, Hpad:Hpad + E].set(r.astype(f32).T)

    s_pad = jnp.zeros((E, Hpad), f32).at[:, :H].set(s.astype(f32))

    # Indices reshaped to (B, 1, Spad) so the (1, 1, TS) block trivially meets
    # the (8,128)-or-full-dim layout rule; padded positions look up row 0 and
    # are sliced away after the call.
    idx_pad = jnp.zeros((B, 1, Spad), jnp.int32)
    idx_pad = idx_pad.at[:, 0, :S].set(indices.astype(jnp.int32))

    # VMEM budget for the chosen tiles (double-buffered pipeline blocks +
    # accumulator scratch + one-hot working set), capped at 64 MiB so it also
    # fits v7x's smaller VMEM.
    vmem_bytes = 4 * (2 * TV * Haug + 2 * E * Hpad + 2 * TS
                      + 2 * E * TS * Hpad + TS * Haug + TV * TS)
    vmem_limit = int(min(64 * 2**20, max(16 * 2**20, 2 * vmem_bytes)))

    grid_spec = pltpu.PrefetchScalarGridSpec(
        num_scalar_prefetch=0,
        grid=(B, n_s, n_k),
        in_specs=[
            pl.BlockSpec((1, 1, TS), lambda b, sj, k: (b, 0, sj)),   # indices row tile
            pl.BlockSpec((TV, Haug), lambda b, sj, k: (k, 0)),       # [W | r^T] vocab tile
            pl.BlockSpec((E, Hpad), lambda b, sj, k: (0, 0)),        # s (grid-invariant)
        ],
        out_specs=pl.BlockSpec((1, E, TS, Hpad),
                               lambda b, sj, k: (b, 0, sj, 0)),      # resident across k
        scratch_shapes=[pltpu.VMEM((TS, Haug), jnp.float32)],        # gather accumulator
    )

    out_pad = pl.pallas_call(
        batch_embedding_kernel,
        out_shape=jax.ShapeDtypeStruct((B, E, Spad, Hpad), jnp.float32),
        grid_spec=grid_spec,
        compiler_params=pltpu.CompilerParams(
            dimension_semantics=("parallel", "parallel", "arbitrary"),
            vmem_limit_bytes=vmem_limit),
    )(idx_pad, w_aug, s_pad)

    return out_pad[:, :, :S, :H]


def batch_embedding_reference(indices, weight, r, s):
    """Pure-JAX reference mirroring the PyTorch forward (2-D input path)."""
    B, S = indices.shape
    E = r.shape[0]
    H = weight.shape[1]
    lookup = weight[None, :, :] * r[:, :, None] * s[:, None, :]      # (E, V, H)
    flat = indices.reshape(-1)                                       # (B*S,)
    gathered = lookup[:, flat, :]                                    # (E, B*S, H)
    return jnp.transpose(gathered.reshape(E, B, S, H), (1, 0, 2, 3))


if __name__ == "__main__":
    # Small, deterministic problem: ensemble=4, vocab=16, embed=32, batch=2, seq=8
    E, V, H = 4, 16, 32
    B, S = 2, 8
    padding_idx = None   # set to an int to zero that embedding row (as in __init__)

    key = jax.random.PRNGKey(0)
    kw, kr, ks, ki = jax.random.split(key, 4)

    # reset_parameters(): fan_in of weight.T (H, V) -> fan = V; relu gain = sqrt(2)
    std = math.sqrt(2.0) / math.sqrt(V)
    weight = std * jax.random.normal(kw, (V, H), dtype=jnp.float32)
    r = 1.0 + std * jax.random.normal(kr, (E, V), dtype=jnp.float32)
    s = 1.0 + std * jax.random.normal(ks, (E, H), dtype=jnp.float32)
    if padding_idx is not None:
        weight = weight.at[padding_idx].set(0.0)

    indices = jax.random.randint(ki, (B, S), 0, V, dtype=jnp.int32)

    out = batch_embedding(indices, weight, r, s)
    out = jax.block_until_ready(out)

    ref = batch_embedding_reference(indices, weight, r, s)
    assert out.shape == (B, E, S, H), out.shape
    assert jnp.allclose(out, ref, atol=1e-5, rtol=1e-5), "mismatch vs reference"

    print("KERNEL_OK")
</pallas_src>

<mosaic_0001>
module attributes {stable_mosaic.version = 11 : i64} {
  func.func @batch_embedding_kernel(%arg0: i32, %arg1: i32, %arg2: i32, %arg3: memref<1x1x8xi32, #tpu.memory_space<vmem>>, %arg4: memref<16x256xf32, #tpu.memory_space<vmem>>, %arg5: memref<4x128xf32, #tpu.memory_space<vmem>>, %arg6: memref<1x4x8x128xf32, #tpu.memory_space<vmem>>, %arg7: memref<8x256xf32, #tpu.memory_space<vmem>>) attributes {dimension_semantics = [#tpu.dimension_semantics<parallel>, #tpu.dimension_semantics<parallel>, #tpu.dimension_semantics<arbitrary>], iteration_bounds = array<i64: 2, 1, 1>, scalar_prefetch = 0 : i64, scratch_operands = 1 : i64, tpu.core_type = #tpu.core_type<tc>, window_params = [{transform_indices = @transform_0, window_bounds = array<i64: 1, 1, 8>}, {transform_indices = @transform_1, window_bounds = array<i64: 16, 256>}, {pipeline_mode = #tpu.pipeline_mode<synchronous>, transform_indices = @transform_2, window_bounds = array<i64: 4, 128>}, {transform_indices = @transform_3, window_bounds = array<i64: 1, 4, 8, 128>}]} {
    %c0_i32 = arith.constant 0 : i32
    %0 = arith.cmpi eq, %arg2, %c0_i32 : i32
    %1 = arith.extui %0 : i1 to i32
    %c0_i32_0 = arith.constant 0 : i32
    %2 = arith.cmpi ne, %1, %c0_i32_0 : i32
    scf.if %2 {
      %cst_11 = arith.constant 0.000000e+00 : f32
      %21 = vector.broadcast %cst_11 : f32 to vector<8x256xf32>
      %c0_12 = arith.constant 0 : index
      %c0_13 = arith.constant 0 : index
      %22 = vector.load %arg7[%c0_12, %c0_13] : memref<8x256xf32, #tpu.memory_space<vmem>>, vector<8x256xf32>
      tpu.vector_store %arg7[%c0_12, %c0_13], %21 {strides = array<i32>} : memref<8x256xf32, #tpu.memory_space<vmem>>, vector<8x256xf32>,
    } else {
    }
    %c0 = arith.constant 0 : index
    %c0_1 = arith.constant 0 : index
    %c0_2 = arith.constant 0 : index
    %3 = vector.load %arg3[%c0, %c0_1, %c0_2] : memref<1x1x8xi32, #tpu.memory_space<vmem>>, vector<1x1x8xi32>
    %4 = vector.shape_cast %3 : vector<1x1x8xi32> to vector<1x8xi32>
    %5 = tpu.iota {dimensions = array<i32: 0>} : vector<16x8xi32>
    %c16_i32 = arith.constant 16 : i32
    %6 = arith.muli %arg2, %c16_i32 : i32
    %7 = vector.broadcast %6 : i32 to vector<16x8xi32>
    %8 = arith.addi %5, %7 : vector<16x8xi32>
    %9 = vector.broadcast %4 : vector<1x8xi32> to vector<16x8xi32>
    %10 = arith.cmpi eq, %8, %9 : vector<16x8xi32>
    %11 = arith.extui %10 : vector<16x8xi1> to vector<16x8xi32>
    %12 = arith.sitofp %11 : vector<16x8xi32> to vector<16x8xf32>
    %c0_3 = arith.constant 0 : index
    %c0_4 = arith.constant 0 : index
    %13 = vector.load %arg7[%c0_3, %c0_4] : memref<8x256xf32, #tpu.memory_space<vmem>>, vector<8x256xf32>
    %c0_5 = arith.constant 0 : index
    %c0_6 = arith.constant 0 : index
    %14 = vector.load %arg4[%c0_5, %c0_6] : memref<16x256xf32, #tpu.memory_space<vmem>>, vector<16x256xf32>
    %cst = arith.constant dense<0.000000e+00> : vector<8x256xf32>
    %15 = tpu.matmul %12, %14, %cst {dimension_numbers = #tpu.dot_dimension_numbers<[0], [0], [1], [1], [0, 1, 1, 1], [], []>} : vector<16x8xf32>, vector<16x256xf32>, vector<8x256xf32> -> vector<8x256xf32>
    %16 = arith.addf %13, %15 : vector<8x256xf32>
    %c0_7 = arith.constant 0 : index
    %c0_8 = arith.constant 0 : index
    %17 = vector.load %arg7[%c0_7, %c0_8] : memref<8x256xf32, #tpu.memory_space<vmem>>, vector<8x256xf32>
    tpu.vector_store %arg7[%c0_7, %c0_8], %16 {strides = array<i32>} : memref<8x256xf32, #tpu.memory_space<vmem>>, vector<8x256xf32>,
    %c0_i32_9 = arith.constant 0 : i32
    %18 = arith.cmpi eq, %arg2, %c0_i32_9 : i32
    %19 = arith.extui %18 : i1 to i32
    %c0_i32_10 = arith.constant 0 : i32
    %20 = arith.cmpi ne, %19, %c0_i32_10 : i32
    scf.if %20 {
      %c0_11 = arith.constant 0 : index
      %c0_12 = arith.constant 0 : index
      %21 = vector.load %arg7[%c0_11, %c0_12] : memref<8x256xf32, #tpu.memory_space<vmem>>, vector<8x256xf32>
      %22 = vector.extract_strided_slice %21 {offsets = [0, 0], sizes = [8, 128], strides = [1, 1]} : vector<8x256xf32> to vector<8x128xf32>
      %23 = vector.extract_strided_slice %21 {offsets = [0, 128], sizes = [8, 1], strides = [1, 1]} : vector<8x256xf32> to vector<8x1xf32>
      %c0_13 = arith.constant 0 : index
      %c0_14 = arith.constant 0 : index
      %24 = vector.load %arg5[%c0_13, %c0_14] : memref<4x128xf32, #tpu.memory_space<vmem>>, vector<1x128xf32>
      %25 = vector.broadcast %23 : vector<8x1xf32> to vector<8x128xf32>
      %26 = arith.mulf %22, %25 : vector<8x128xf32>
      %27 = vector.broadcast %24 : vector<1x128xf32> to vector<8x128xf32>
      %28 = arith.mulf %26, %27 : vector<8x128xf32>
      %c0_15 = arith.constant 0 : index
      %c0_16 = arith.constant 0 : index
      %c0_17 = arith.constant 0 : index
      %c0_18 = arith.constant 0 : index
      %29 = vector.load %arg6[%c0_15, %c0_16, %c0_17, %c0_18] : memref<1x4x8x128xf32, #tpu.memory_space<vmem>>, vector<1x1x8x128xf32>
      %30 = vector.shape_cast %29 : vector<1x1x8x128xf32> to vector<8x128xf32>
      %31 = vector.shape_cast %28 : vector<8x128xf32> to vector<1x1x8x128xf32>
      tpu.vector_store %arg6[%c0_15, %c0_16, %c0_17, %c0_18], %31 {strides = array<i32>} : memref<1x4x8x128xf32, #tpu.memory_space<vmem>>, vector<1x1x8x128xf32>,
      %32 = vector.extract_strided_slice %21 {offsets = [0, 129], sizes = [8, 1], strides = [1, 1]} : vector<8x256xf32> to vector<8x1xf32>
      %c1 = arith.constant 1 : index
      %c0_19 = arith.constant 0 : index
      %33 = vector.load %arg5[%c1, %c0_19] : memref<4x128xf32, #tpu.memory_space<vmem>>, vector<1x128xf32>
      %34 = vector.broadcast %32 : vector<8x1xf32> to vector<8x128xf32>
      %35 = arith.mulf %22, %34 : vector<8x128xf32>
      %36 = vector.broadcast %33 : vector<1x128xf32> to vector<8x128xf32>
      %37 = arith.mulf %35, %36 : vector<8x128xf32>
      %c0_20 = arith.constant 0 : index
      %c1_21 = arith.constant 1 : index
      %c0_22 = arith.constant 0 : index
      %c0_23 = arith.constant 0 : index
      %38 = vector.load %arg6[%c0_20, %c1_21, %c0_22, %c0_23] : memref<1x4x8x128xf32, #tpu.memory_space<vmem>>, vector<1x1x8x128xf32>
      %39 = vector.shape_cast %38 : vector<1x1x8x128xf32> to vector<8x128xf32>
      %40 = vector.shape_cast %37 : vector<8x128xf32> to vector<1x1x8x128xf32>
      tpu.vector_store %arg6[%c0_20, %c1_21, %c0_22, %c0_23], %40 {strides = array<i32>} : memref<1x4x8x128xf32, #tpu.memory_space<vmem>>, vector<1x1x8x128xf32>,
      %41 = vector.extract_strided_slice %21 {offsets = [0, 130], sizes = [8, 1], strides = [1, 1]} : vector<8x256xf32> to vector<8x1xf32>
      %c2 = arith.constant 2 : index
      %c0_24 = arith.constant 0 : index
      %42 = vector.load %arg5[%c2, %c0_24] : memref<4x128xf32, #tpu.memory_space<vmem>>, vector<1x128xf32>
      %43 = vector.broadcast %41 : vector<8x1xf32> to vector<8x128xf32>
      %44 = arith.mulf %22, %43 : vector<8x128xf32>
      %45 = vector.broadcast %42 : vector<1x128xf32> to vector<8x128xf32>
      %46 = arith.mulf %44, %45 : vector<8x128xf32>
      %c0_25 = arith.constant 0 : index
      %c2_26 = arith.constant 2 : index
      %c0_27 = arith.constant 0 : index
      %c0_28 = arith.constant 0 : index
      %47 = vector.load %arg6[%c0_25, %c2_26, %c0_27, %c0_28] : memref<1x4x8x128xf32, #tpu.memory_space<vmem>>, vector<1x1x8x128xf32>
      %48 = vector.shape_cast %47 : vector<1x1x8x128xf32> to vector<8x128xf32>
      %49 = vector.shape_cast %46 : vector<8x128xf32> to vector<1x1x8x128xf32>
      tpu.vector_store %arg6[%c0_25, %c2_26, %c0_27, %c0_28], %49 {strides = array<i32>} : memref<1x4x8x128xf32, #tpu.memory_space<vmem>>, vector<1x1x8x128xf32>,
      %50 = vector.extract_strided_slice %21 {offsets = [0, 131], sizes = [8, 1], strides = [1, 1]} : vector<8x256xf32> to vector<8x1xf32>
      %c3 = arith.constant 3 : index
      %c0_29 = arith.constant 0 : index
      %51 = vector.load %arg5[%c3, %c0_29] : memref<4x128xf32, #tpu.memory_space<vmem>>, vector<1x128xf32>
      %52 = vector.broadcast %50 : vector<8x1xf32> to vector<8x128xf32>
      %53 = arith.mulf %22, %52 : vector<8x128xf32>
      %54 = vector.broadcast %51 : vector<1x128xf32> to vector<8x128xf32>
      %55 = arith.mulf %53, %54 : vector<8x128xf32>
      %c0_30 = arith.constant 0 : index
      %c3_31 = arith.constant 3 : index
      %c0_32 = arith.constant 0 : index
      %c0_33 = arith.constant 0 : index
      %56 = vector.load %arg6[%c0_30, %c3_31, %c0_32, %c0_33] : memref<1x4x8x128xf32, #tpu.memory_space<vmem>>, vector<1x1x8x128xf32>
      %57 = vector.shape_cast %56 : vector<1x1x8x128xf32> to vector<8x128xf32>
      %58 = vector.shape_cast %55 : vector<8x128xf32> to vector<1x1x8x128xf32>
      tpu.vector_store %arg6[%c0_30, %c3_31, %c0_32, %c0_33], %58 {strides = array<i32>} : memref<1x4x8x128xf32, #tpu.memory_space<vmem>>, vector<1x1x8x128xf32>,
    } else {
    }
    return
  }
  func.func @transform_0(%arg0: i32, %arg1: i32, %arg2: i32) -> (i32, i32, i32) {
    %c0_i32 = arith.constant 0 : i32
    %c0_i32_0 = arith.constant 0 : i32
    return %arg0, %c0_i32, %arg1 : i32, i32, i32
  }
  func.func @transform_1(%arg0: i32, %arg1: i32, %arg2: i32) -> (i32, i32) {
    %c0_i32 = arith.constant 0 : i32
    %c0_i32_0 = arith.constant 0 : i32
    return %arg2, %c0_i32 : i32, i32
  }
  func.func @transform_2(%arg0: i32, %arg1: i32, %arg2: i32) -> (i32, i32) {
    %c0_i32 = arith.constant 0 : i32
    %c0_i32_0 = arith.constant 0 : i32
    %c0_i32_1 = arith.constant 0 : i32
    return %c0_i32, %c0_i32_0 : i32, i32
  }
  func.func @transform_3(%arg0: i32, %arg1: i32, %arg2: i32) -> (i32, i32, i32, i32) {
    %c0_i32 = arith.constant 0 : i32
    %c0_i32_0 = arith.constant 0 : i32
    %c0_i32_1 = arith.constant 0 : i32
    return %arg0, %c0_i32, %arg1, %c0_i32_0 : i32, i32, i32, i32
  }
}

</mosaic_0001>

<bundles_post_ra>
// kernel: tpu_custom_call.1
= control target key start
LH: loop header
LB: loop body
LE: loop exit
PB: predicated region body
PF: predicated region fallthrough
CT: control target
= control target key end

     0   :  { %8 = vsyncpa [#allocation4], 0  ;;  %s1075_s0 = inlined_call_operand.hbm [shape: s32[2,1,8], index: 0, kind: input, shape index: {}]   ;;  %s1076_s1 = inlined_call_operand.hbm [shape: f32[16,256], index: 1, kind: input, shape index: {}]   ;;  %s1077_s2 = inlined_call_operand.hbm [shape: f32[4,128], index: 2, kind: input, shape index: {}]   ;;  %s1078_s3 = inlined_call_operand.hbm [shape: f32[2,4,8,128], index: 3, kind: output, shape index: {}]  }
   0x1   :  { %10 = vsyncpa [#allocation4 + $0x1], 0 }
   0x2   :  { %11 = vsyncpa [#allocation7], 0 }
   0x3   :  { %12 = vsyncpa [#allocation5], 0 }
   0x4   :  { %14 = vsyncpa [#allocation5 + $0x1], 0  ;;  %s886_s12 = smov 0   ;;  %s888_s13 = smov 0  }
   0x5   :  { %s890_s14 = smov 0   ;;  %s892_s15 = smov 0  }
   0x6   :  { %s894_s16 = smov 0   ;;  %s896_s17 = smov 0  }
   0x7 LB: > { %s562_s18 = sadd.s32 4294967295, %s851_s17   ;;  %s563_s19 = sadd.s32 4294967294, %s851_s17   ;;  %s851_s17 = sphi %s896_s17, %s20_s17   ;;  %s847_s16 = sphi %s894_s16, %s1098_s16   ;;  %s843_s15 = sphi %s892_s15, %s1097_s15   ;;  %s839_s14 = sphi %s890_s14, %s1096_s14   ;;  %s835_s13 = sphi %s888_s13, %s1095_s13   ;;  %s831_s12 = sphi %s886_s12, %s1094_s12  }
   0x8   : > { %p61_p0 = scmp.ne.s32.totalorder %s835_s13, %s831_s12  ;;  %p920_p1 = scmp.eq.s32.totalorder %s562_s18, 0 }
   0x9   : > { %p924_p2 = scmp.eq.s32.totalorder %s562_s18, 1  ;;  %p140_p3 = scmp.eq.s32.totalorder %s563_s19, 1 }
   0xa   : > { %s1082_s20 = scalar_select %p920_p1, 1, 0 }
   0xb   : > { %p930_p4 = por %p920_p1, %p61_p0  ;;  %p564_p5 = scmp.ge.s32.totalorder %s851_s17, 1 }
   0xc   : > { %p935_p6 = por %p140_p3, %p61_p0  ;;  %p147_p7 = scmp.lt.s32.totalorder %s851_s17, 3 }
   0xd   : > { %s1084_s22 = scalar_select %p930_p4, 1, 0 }
   0xe   : > { %s1085_s23 = scalar_select %p935_p6, 1, 0 }
   0xf   : > { %p940_p8 = pnand %p564_p5, %p147_p7  ;;  %s853_s25 = smov [#allocation6]  }
  0x10   : > { %s163_s26 = sshll.u32 %s853_s25, 4  ;;  %s854_s28 = smov [#allocation8]   ;;  %s164_s26 = int_to_ptr.vmem [resolvable:$true] %s163_s26 }
  0x11   : > { %p602_p9 = pneg %p940_p8  ;;  %s177_s29 = sshll.u32 %s854_s28, 4  ;;  %s178_s29 = int_to_ptr.vmem [resolvable:$true] %s177_s29 }
  0x12   : > { %s698_s30 = scalar_lea.vmem %s164_s26, 512  ;;  %p706_p5 = scmp.lt.s32.totalorder %s164_s26, %s164_s26 }
  0x13   : > { %p949_p11 = pnand %p602_p9, %p920_p1  ;;  %p699_p13 = scmp.ne.s32.totalorder %s164_s26, %s698_s30 }
  0x14   : > { %p707_p7 = scmp.lt.s32.totalorder %s698_s30, %s698_s30 }
  0x15   : > { %p689_p12 = pneg %p949_p11 }
  0x16   : > { %p708_p10 = por %p707_p7, %p706_p5 }
  0x17   : > { %p701_p0 = pnand %p699_p13, %p689_p12 }
  0x19   : > { %p702_p3 = pneg %p701_p0 }
  0x1b   : > { %p709_p9 = pnand %p708_p10, %p702_p3 }
  0x1d   : > { %712 = shalt.err (!%p709_p9)
}
  0x1e   : > { %s855_s4 = smov 256   ;;  %s856_s5 = smov 16  }
  0x1f   : > { %605 = dma.hbm_to_vmem [thread:$0]  (!%p949_p11), %s1076_s1, 512, %s164_s26, [#allocation7], %s855_s4, %s855_s4, %s856_s5  }
  0x20   : > { %s724_s8 = scalar_lea.vmem %s178_s29, 64  ;;  %p732_p1 = scmp.lt.s32.totalorder %s178_s29, %s178_s29 }
  0x21   : > { %p725_p6 = scmp.ne.s32.totalorder %s178_s29, %s724_s8  ;;  %p733_p4 = scmp.lt.s32.totalorder %s724_s8, %s724_s8 }
  0x23   : > { %p727_p13 = pnand %p725_p6, %p689_p12  ;;  %p734_p5 = por %p733_p4, %p732_p1 }
  0x25   : > { %p728_p0 = pneg %p727_p13 }
  0x27   : > { %p735_p10 = pnand %p734_p5, %p728_p0 }
  0x29   : > { %738 = shalt.err (!%p735_p10)
}
  0x2a   : > { %608 = dma.hbm_to_vmem [thread:$0]  (!%p949_p11), %s1077_s2, 64, %s178_s29, [#allocation7]  }
  0x2b   : > { %s39_s11 = sadd.s32 1, %s847_s16  ;;  %s48_s18 = sadd.s32 1, %s839_s14 }
  0x2c   : > { %p41_p1 = scmp.ge.s32.totalorder %s39_s11, 2  ;;  %p55_p4 = scmp.ne.s32.totalorder %s839_s14, %s835_s13 }
  0x2d   : > { %p56_p6 = scmp.eq.s32.totalorder %s851_s17, 0  ;;  %p619_p12 = scmp.lt.s32.totalorder %s851_s17, 2 }
  0x2e   : > { %s1100_s11 = smov (%p41_p1, %s39_s11), 0  ;;  %p981_p7 = por %p924_p2, %p55_p4 }
  0x2f   : > { %p57_p3 = por %p56_p6, %p55_p4  ;;  %s43_s25 = ssub.s32 %s847_s16, %s1100_s11 }
  0x30   : > { %s188_s26 = sand.u32 1, %s839_s14   ;;  %p46_p9 = scmp.eq.s32.totalorder %s43_s25, 0 }
  0x31   : > { %s568_s27 = sshll.u32 %s847_s16, 4  ;;  %s191_s5 = scalar_lea.vmem [#allocation3], %s188_s26 }
  0x32   : > { %s990_s28 = scalar_select %p46_p9, %s839_s14, %s48_s18  }
  0x33   : > { %s197_s4 = scalar_lea.hbm %s1075_s0, %s568_s27  ;;  %s199_s6 = sshll.u32 %s191_s5, 4  ;;  %s200_s6 = int_to_ptr.vmem [resolvable:$true] %s199_s6 }
  0x34   : > { %p997_p11 = pnand %p619_p12, %p57_p3  ;;  %s189_s7 = scalar_lea.sflag [#allocation4], %s188_s26 }
  0x35   : > { %s752_s8 = scalar_lea.vmem %s200_s6, 16  ;;  %s857_s9 = smov [#allocation3]  }
  0x36   : > { %p741_p2 = pneg %p997_p11  ;;  %p753_p13 = scmp.ne.s32.totalorder %s200_s6, %s752_s8 }
  0x37   : > { %s757_s10 = sshll.u32 %s857_s9, 4  ;;  %s758_s10 = int_to_ptr.vmem [resolvable:$false] %s757_s10 }
  0x38   : > { %p755_p0 = pnand %p753_p13, %p741_p2  ;;  %s759_s18 = scalar_lea.vmem %s758_s10, 32 }
  0x39   : > { %p760_p10 = scmp.lt.s32.totalorder %s200_s6, %s758_s10  ;;  %p761_p1 = scmp.lt.s32.totalorder %s759_s18, %s752_s8 }
  0x3a   : > { %p756_p5 = pneg %p755_p0 }
  0x3b   : > { %p762_p4 = por %p761_p1, %p760_p10 }
  0x3d   : > { %p763_p6 = pnand %p762_p4, %p756_p5 }
  0x3f   : > { %766 = shalt.err (!%p763_p6)
}
  0x40   : > { %612 = dma.hbm_to_vmem [thread:$0]  (!%p997_p11), %s197_s4, 16, %s200_s6, %s189_s7  }
  0x41   : > { %208 = sbr.rel (%p940_p8) target bundleno = 552 (0x228), region = 32  ;;  %s1008_s25 = sand.u32 (!%p940_p8), 1, %s835_s13  }
  0x42   : > { %s211_s26 = scalar_lea.sflag (!%p940_p8), [#allocation4], %s1008_s25  ;;  %s213_s27 = scalar_lea.vmem (!%p940_p8), [#allocation3], %s1008_s25 }
  0x43   : > { %p1090_p12 = scmp.ne.s32.totalorder (!%p940_p8), %s1084_s22, 0 }
  0x46   : > { %818 = dma.done.wait (%p1090_p12), %s211_s26, 16  }
  0x47   : > { %820 = vsyncadd (%p1090_p12), %s211_s26, 4294967280  ;;  %p1091_p3 = scmp.ne.s32.totalorder %s1082_s20, 0 }
  0x49   : > { %822 = dma.done.wait (%p1091_p3), [#allocation7], 576  }
  0x4a   : > { %824 = vsyncadd (%p1091_p3), [#allocation7], 4294966720  ;;  %v251_v0 = vlaneseq  ;;  %v858_v1 = vmov 0.0   ;;  %v573_v4 = vld [vmem:[%s213_s27] ss:$0 sm:$0xff]  ;;  %v272_v6 = vld [vmem:[#allocation6 + $0x10] sm:$0xff] }
  0x4b   : > { %374 = vmatprep.mubr.f32.mxu0 %v858_v1  ;;  %v273_v5 = vld [vmem:[#allocation6 + $0x18] sm:$0xff]  ;;  %v271_v7 = vld [vmem:[#allocation6 + $0x8] sm:$0xff]  ;;  %v270_v8 = vld [vmem:[#allocation6] sm:$0xff]  ;;  %vm306_vm2 = vcmask 130048   ;;  %v859_v12 = vmov 0   ;;  %v860_v13 = vmov 2  }
  0x4c   : > { %v252_v2 = vshrl.u32 %v251_v0, 7  ;;  %338 = vmatprep.subr.mxu0 %v273_v5  ;;  %682 = vset.pattern.permute.xlu1 %v859_v12  ;;  %v861_v16 = vmov 1   ;;  %v862_v17 = vmov 3   ;;  %s572_s20 = sshll.u32 %s1008_s25, 5  ;;  %v580_v18 = vld [vmem:[#allocation8 + $0x2] ss:$0 sm:$0xff] }
  0x4d   : > { %339 = vmatpush1.msra.mxu0 %v272_v6  ;;  %v577_v20 = vld [vmem:[#allocation8] ss:$0 sm:$0xff]  ;;  %s242_s22 = scalar_lea.vmem [#allocation9], %s572_s20  ;;  %v578_v26 = vld [vmem:[#allocation8 + $0x1] ss:$0 sm:$0xff]  ;;  %s589_s29 = sshll.u32 %s843_s15, 9 }
  0x4e   : > { %v253_v3 = vadd.s32 8, %v252_v2  ;;  %vm262_vm0 = vcmp.eq.s32.totalorder %v252_v2, %v573_v4  ;;  %340 = vmatprep.subr.mxu0 %v271_v7  ;;  %s457_s24 = sshll.u32 %s242_s22, 4  ;;  %v582_v30 = vld [vmem:[#allocation8 + $0x3] ss:$0 sm:$0xff]  ;;  %s1027_s5 = scalar_lea.hbm %s1078_s3, %s589_s29  ;;  %s1022_s24 = int_to_ptr.vmem [resolvable:$true] %s457_s24 }
  0x4f   : > { %v574_v9 = vsel %vm262_vm0, 1.0, %v858_v1  ;;  %341 = vmatpush1.msra.mxu0 %v270_v8  ;;  %s443_s6 = scalar_lea.sflag [#allocation5], %s1008_s25  ;;  %s767_s21 = scalar_lea.vmem %s1022_s24, 512 }
  0x50   : > { %vm263_vm1 = vcmp.eq.s32.totalorder %v253_v3, %v573_v4  ;;  %274 = vxpose.xlu0.b32.start [1/2] (short) (narrow) %v574_v9, 8  ;;  %p768_p8 = scmp.ne.s32.totalorder %s1022_s24, %s767_s21  ;;  %s863_s15 = smov [#allocation9]  }
  0x51   : > { %v575_v10 = vsel %vm263_vm1, 1.0, %v858_v1  ;;  %s771_s7 = sshll.u32 %s863_s15, 4  ;;  %s772_s7 = int_to_ptr.vmem [resolvable:$false] %s771_s7 }
  0x52   : > { %p769_p9 = pnand %p768_p8, %p981_p7  ;;  %s773_s8 = scalar_lea.vmem %s772_s7, 1024 }
  0x53   : > { %p774_p2 = scmp.lt.s32.totalorder %s1022_s24, %s772_s7  ;;  %p775_p13 = scmp.lt.s32.totalorder %s773_s8, %s767_s21 }
  0x54   : > { %275 = vxpose.xlu0.b32.end [2/2] (short) (narrow) %v575_v10, 8  ;;  %p770_p11 = pneg %p769_p9 }
  0x55   : > { %p776_p0 = por %p775_p13, %p774_p2 }
  0x57   : > { %p777_p5 = pnand %p776_p0, %p770_p11 }
  0x7d   : > { %684 = vset.pattern.permute.xlu0 %v860_v13 }
  0xcc   : > { %v290_v11 = vpop.trf.xlu0 }
  0xcd   : > { %576 = vmatmul.mubr.msk.f32.vlgmr.msra.gmra.mxu0 %vm306_vm2, %v290_v11 }
 0x18d   : > { %v376_v14 = vpop.f32.mrf.mxu0 }
 0x18f   : > { %v378_v15 = vpop.f32.mrf.mxu0 }
 0x190   : > { %418 = vperm.xlu0 %684, %v378_v15   ;;  %393 = vperm.xlu1 %682, %v378_v15  }
 0x194   : > { %683 = vset.pattern.permute.xlu1 %v861_v16  ;;  %686 = vset.pattern.permute.xlu0 %v862_v17 }
 0x195   : > { %405 = vperm.xlu1 %683, %v378_v15  }
 0x199   : > { %685 = vset.pattern.permute.xlu1 %v862_v17 }
 0x19a   : > { %431 = vperm.xlu1 %685, %v378_v15  }
 0x20b   : > { %v419_v19 = vpop.permute.xlu0 %418  ;;  %v394_v21 = vpop.permute.xlu1 %393 }
 0x20c   : > { %v421_v22 = vmul.f32 %v419_v19, %v376_v14  ;;  %v396_v23 = vmul.f32 %v394_v21, %v376_v14 }
 0x20e   : > { %v426_v24 = vmul.f32 %v580_v18, %v421_v22  ;;  %v401_v25 = vmul.f32 %v577_v20, %v396_v23 }
 0x210   : > { %581 = vst [vmem:[%s242_s22 + $0x10] sm:$0xff] %v426_v24  ;;  %402 = vst [vmem:[%s242_s22] sm:$0xff] %v401_v25  ;;  %v406_v27 = vpop.permute.xlu1 %405 }
 0x211   : > { %v408_v28 = vmul.f32 %v406_v27, %v376_v14 }
 0x213   : > { %v413_v29 = vmul.f32 %v578_v26, %v408_v28 }
 0x215   : > { %579 = vst [vmem:[%s242_s22 + $0x8] sm:$0xff] %v413_v29  ;;  %v432_v31 = vpop.permute.xlu1 %431 }
 0x216   : > { %v434_v32 = vmul.f32 %v432_v31, %v376_v14 }
 0x218   : > { %v439_v33 = vmul.f32 %v582_v30, %v434_v32 }
 0x21a   : > { %583 = vst [vmem:[%s242_s22 + $0x18] sm:$0xff] %v439_v33 }
 0x21b   : > { %780 = shalt.err (!%p777_p5)
}
 0x21c   : > { %s781_s9 = scalar_lea.hbm %s1027_s5, 512  ;;  %s785_s26 = scalar_lea.hbm %s1078_s3, 1024 }
 0x21d   : > { %p782_p10 = scmp.ne.s32.totalorder %s1027_s5, %s781_s9  ;;  %p786_p6 = scmp.lt.s32.totalorder %s1027_s5, %s1078_s3 }
 0x21e   : > { %p787_p12 = scmp.lt.s32.totalorder %s785_s26, %s781_s9 }
 0x21f   : > { %p783_p1 = pnand %p782_p10, %p981_p7 }
 0x220   : > { %p788_p3 = por %p787_p12, %p786_p6 }
 0x221   : > { %p784_p4 = pneg %p783_p1 }
 0x223   : > { %p789_p8 = pnand %p788_p3, %p784_p4 }
 0x225   : > { %792 = shalt.err (!%p789_p8)
}
 0x226   : > { %s864_s22 = smov 128   ;;  %s865_s29 = smov 8  }
 0x227   : > { %600 = dma.vmem_to_hbm [thread:$0]  (%p981_p7), %s1022_s24, 512, %s1027_s5, %s443_s6, %s864_s22, %s864_s22, %s865_s29  }
 0x228 PF: > { %s472_s30 = sand.u32 1, %s831_s12   ;;  %p1092_p9 = scmp.ne.s32.totalorder %s1085_s23, 0 }
 0x229   : > { %p1093_p11 = scmp.ge.s32.totalorder %s851_s17, 2  ;;  %s473_s4 = scalar_lea.sflag [#allocation5], %s472_s30 }
 0x22b   : > { %p614_p2 = pnand %p1093_p11, %p1092_p9 }
 0x22d   : > { %p615_p13 = pneg %p614_p2 }
 0x22f   : > { %826 = dma.done.wait (%p615_p13), %s473_s4, 512  }
 0x230   : > { %828 = vsyncadd (%p615_p13), %s473_s4, 4294966784  ;;  %s20_s17 = sadd.s32 1, %s851_s17   ;;  %s1094_s12 = smov %s835_s13 }
 0x231   : > { %p17_p0 = scmp.ge.s32.totalorder %s20_s17, 4   ;;  %s1095_s13 = smov %s839_s14 }
 0x232   : > { %s1096_s14 = smov %s990_s28  ;;  %s1097_s15 = smov %s847_s16 }
 0x233   : > { %s1098_s16 = smov %s1100_s11  ;;  %19 = sbr.rel (!%p17_p0) target bundleno = 7 (0x7), region = 97 }
 0x238   :  { %478 = vsyncpa [#allocation4], 1 }
 0x239   :  { %480 = vsyncpa [#allocation4 + $0x1], 1 }
 0x23a   :  { %481 = vsyncpa [#allocation7], 1 }
 0x23b   :  { %482 = vsyncpa [#allocation5], 1 }
 0x23c   :  { %484 = vsyncpa [#allocation5 + $0x1], 1 }

</bundles_post_ra>
